<compile_context>
chip_gen: v5e
topology: v5e:2x2
jax: 0.10.0
libtpu: 0.0.40
codegen_flags: <defaults>
</compile_context>

<pallas_src>
import functools

import jax
import jax.numpy as jnp
from jax.experimental import pallas as pl
from jax.experimental.pallas import tpu as pltpu


def _softmax_rows(x):
    m = jnp.max(x, axis=1, keepdims=True)
    e = jnp.exp(x - m)
    # approx reciprocal: single EUP op in an otherwise idle slot (vs multi-op VPU divide).
    return e * pl.reciprocal(jnp.sum(e, axis=1, keepdims=True), approx=True)


def mi_triplet_loss_kernel(emb_ref, idx_ref, out_ref, *, margin, alfa):
    emb = emb_ref[...]                         # [N, D], native dtype (f32 or bf16)
    idx = idx_ref[...]                         # [3T, 1] int32: [anchor; positive; negative]
    n = emb.shape[0]
    t3 = idx.shape[0]
    t = t3 // 3

    # ---- fused row gather: ONE one-hot matmul for all 3T rows (single logical MXU gather) ----
    # One-hot values 0/1 are exact in any float dtype; precision=HIGHEST makes the gather of
    # f32 embeddings exact (the hi/lo split of a 0/1 one-hot has a zero low part).
    col_iota = jax.lax.broadcasted_iota(jnp.int32, (t3, n), 1)
    onehot = (col_iota == idx).astype(emb.dtype)                        # [3T, N]
    g = jnp.dot(onehot, emb, preferred_element_type=jnp.float32,
                precision=jax.lax.Precision.HIGHEST)                    # [3T, D] f32

    pivot = g[0:t]                 # [T, D]   (slices at sublane multiples of 8; T % 8 == 0)
    positives = g[t:2 * t]         # [T, D]
    negatives = g[2 * t:3 * t]     # [T, D]

    # ---- triplet hinge loss: mean(relu(||a-p||^2 - ||a-n||^2 + margin)) ----
    ap = jnp.sum((pivot - positives) ** 2, axis=1, keepdims=True)       # [T, 1]
    an = jnp.sum((pivot - negatives) ** 2, axis=1, keepdims=True)       # [T, 1]
    triplet_loss = jnp.sum(jnp.maximum(ap - an + margin, 0.0)) * (1.0 / t)

    # ---- MI regularizer ----
    # A = softmax(positives[:, :3]), B = softmax(positives[:, 3:]).
    za = _softmax_rows(positives[:, :3])                                # [T, 3]
    zb = _softmax_rows(positives[:, 3:])                                # [T, 3]

    # ppt = A^T B + B^T A  (== P + P^T, symmetric).  Built on the VPU (broadcast multiply) +
    # XLU (sublane reduce) — no second MXU fill/drain/pop round trip for 9 outputs.
    cols = []
    for j in range(3):
        # column j of ppt (equals row j by symmetry): sum_k A[k,:] * B[k,j] + B[k,:] * A[k,j]
        cols.append(jnp.sum(za * zb[:, j:j + 1] + zb * za[:, j:j + 1],
                            axis=0, keepdims=True))                     # [1, 3]
    ppt = jnp.concatenate(cols, axis=0)                                 # [3, 3]

    # (P + P^T) / sum(P + P^T) == (P + P^T) / 2 / sum(P), matching the PyTorch MI.
    p = ppt * pl.reciprocal(jnp.sum(ppt, keepdims=True), approx=True)   # [3, 3]
    pi = jnp.sum(p, axis=1, keepdims=True)                              # [3, 1]
    pj = jnp.sum(p, axis=0, keepdims=True)                              # [1, 3]
    mi = jnp.sum(p * (jnp.log(pi) + jnp.log(pj) - jnp.log(p)))

    # Scalar result straight to SMEM: no padded VMEM tile + writeback DMA for one number.
    out_ref[0, 0] = triplet_loss + alfa * mi


def mi_triplet_loss(embeddings, triplets, margin=1.0, alfa=5.0):
    """Returns (loss, num_triplets) like MITripletLoss.forward."""
    n, d = embeddings.shape
    t, three = triplets.shape
    assert three == 3 and d == 6, "MI term requires embedding dim 6 (3 + 3 split)"
    assert t % 8 == 0, "keep T a multiple of 8 so in-kernel sublane block slices stay tile-aligned"

    # Stack the gather indices wrapper-side (plain XLA layout plumbing, no in-kernel concat):
    # order [anchor; positive; negative] so the kernel needs exactly one one-hot matmul.
    stacked_idx = jnp.concatenate(
        [triplets[:, 0], triplets[:, 1], triplets[:, 2]], axis=0
    ).astype(jnp.int32)[:, None]                                        # [3T, 1]

    kernel = functools.partial(mi_triplet_loss_kernel,
                               margin=float(margin), alfa=float(alfa))
    itemsize = jnp.dtype(embeddings.dtype).itemsize
    cost = pl.CostEstimate(
        flops=int(2 * 3 * t * n * d + 20 * t * d + 40 * t),       # gather matmul + distances + ppt
        transcendentals=int(6 * t + 2 * t + 28),                  # exps + reciprocals + logs
        bytes_accessed=int(n * d * itemsize + 3 * t * 4 + 4),
    )
    loss = pl.pallas_call(
        kernel,
        in_specs=[
            pl.BlockSpec(memory_space=pltpu.MemorySpace.VMEM),    # embeddings (whole array)
            pl.BlockSpec(memory_space=pltpu.MemorySpace.VMEM),    # stacked gather indices
        ],
        out_specs=pl.BlockSpec(memory_space=pltpu.MemorySpace.SMEM),
        out_shape=jax.ShapeDtypeStruct((1, 1), jnp.float32),
        cost_estimate=cost,
    )(embeddings, stacked_idx)
    return loss[0, 0], t


def mi_triplet_loss_ref(embeddings, triplets, margin=1.0, alfa=5.0):
    """Pure-JAX reference mirroring the (intended) PyTorch forward."""
    pivot = embeddings[triplets[:, 0]]
    positives = embeddings[triplets[:, 1]]
    negatives = embeddings[triplets[:, 2]]
    ap = jnp.sum((pivot - positives) ** 2, axis=1)
    an = jnp.sum((pivot - negatives) ** 2, axis=1)
    tl = jnp.mean(jnp.maximum(ap - an + margin, 0.0))
    pos_sm = jax.nn.softmax(positives[:, :3], axis=1)
    piv_sm = jax.nn.softmax(positives[:, 3:], axis=1)
    P = pos_sm.T @ piv_sm
    Psum = P.sum()
    P = (P + P.T) / 2.0 / Psum
    Pi = P.sum(axis=1, keepdims=True)
    Pj = P.sum(axis=0, keepdims=True)
    mi = jnp.sum(P * (jnp.log(Pi) + jnp.log(Pj) - jnp.log(P)))
    return tl + alfa * mi


if __name__ == "__main__":
    key = jax.random.PRNGKey(0)
    k_emb, k_trip = jax.random.split(key)

    N, D, T = 16, 6, 8   # D = 6 so positives[:, :3] / positives[:, 3:] both have 3 cols
    embeddings = jax.random.normal(k_emb, (N, D), dtype=jnp.float32)
    # TODO(synk): triplet_selector.get_triplets() (hard-negative mining) has no Pallas
    # equivalent; deterministic random triplet indices are passed in directly instead.
    triplets = jax.random.randint(k_trip, (T, 3), 0, N, dtype=jnp.int32)

    loss, n_triplets = mi_triplet_loss(embeddings, triplets, margin=1.0, alfa=5.0)
    loss = jax.block_until_ready(loss)

    ref = mi_triplet_loss_ref(embeddings, triplets, margin=1.0, alfa=5.0)
    # Tolerance loosened vs an exact-divide version: pl.reciprocal(approx=True) introduces
    # ~1e-4-level relative error in the softmax / P normalization (gather itself is exact).
    assert jnp.allclose(loss, ref, rtol=2e-3, atol=2e-3), (loss, ref)
    assert n_triplets == T
    print("KERNEL_OK")
</pallas_src>

<mosaic_0001>
module attributes {stable_mosaic.version = 11 : i64} {
  func.func @mi_triplet_loss_kernel(%arg0: memref<16x6xf32, #tpu.memory_space<vmem>>, %arg1: memref<24x1xi32, #tpu.memory_space<vmem>>, %arg2: memref<1x1xf32, #tpu.memory_space<smem>>) attributes {dimension_semantics = [], scalar_prefetch = 0 : i64, scratch_operands = 0 : i64, tpu.core_type = #tpu.core_type<tc>} {
    %c0 = arith.constant 0 : index
    %c0_0 = arith.constant 0 : index
    %0 = vector.load %arg0[%c0, %c0_0] : memref<16x6xf32, #tpu.memory_space<vmem>>, vector<16x6xf32>
    %c0_1 = arith.constant 0 : index
    %c0_2 = arith.constant 0 : index
    %1 = vector.load %arg1[%c0_1, %c0_2] : memref<24x1xi32, #tpu.memory_space<vmem>>, vector<24x1xi32>
    %2 = tpu.iota {dimensions = array<i32: 1>} : vector<24x16xi32>
    %3 = vector.broadcast %1 : vector<24x1xi32> to vector<24x16xi32>
    %4 = arith.cmpi eq, %2, %3 : vector<24x16xi32>
    %5 = arith.extui %4 : vector<24x16xi1> to vector<24x16xi32>
    %6 = arith.sitofp %5 : vector<24x16xi32> to vector<24x16xf32>
    %cst = arith.constant dense<0.000000e+00> : vector<24x6xf32>
    %7 = tpu.matmul %6, %0, %cst {dimension_numbers = #tpu.dot_dimension_numbers<[1], [0], [0], [1], [0, 0, 1, 1], [], []>, precision = #tpu.contract_precision<fp32>} : vector<24x16xf32>, vector<16x6xf32>, vector<24x6xf32> -> vector<24x6xf32>
    %8 = vector.extract_strided_slice %7 {offsets = [0, 0], sizes = [8, 6], strides = [1, 1]} : vector<24x6xf32> to vector<8x6xf32>
    %9 = vector.extract_strided_slice %7 {offsets = [8, 0], sizes = [8, 6], strides = [1, 1]} : vector<24x6xf32> to vector<8x6xf32>
    %10 = vector.extract_strided_slice %7 {offsets = [16, 0], sizes = [8, 6], strides = [1, 1]} : vector<24x6xf32> to vector<8x6xf32>
    %11 = arith.subf %8, %9 : vector<8x6xf32>
    %12 = arith.mulf %11, %11 : vector<8x6xf32>
    %cst_3 = arith.constant dense<0.000000e+00> : vector<8xf32>
    %13 = vector.multi_reduction <add>, %12, %cst_3 [1] : vector<8x6xf32> to vector<8xf32>
    %14 = vector.shape_cast %13 : vector<8xf32> to vector<8x1xf32>
    %15 = arith.subf %8, %10 : vector<8x6xf32>
    %16 = arith.mulf %15, %15 : vector<8x6xf32>
    %cst_4 = arith.constant dense<0.000000e+00> : vector<8xf32>
    %17 = vector.multi_reduction <add>, %16, %cst_4 [1] : vector<8x6xf32> to vector<8xf32>
    %18 = vector.shape_cast %17 : vector<8xf32> to vector<8x1xf32>
    %19 = arith.subf %14, %18 : vector<8x1xf32>
    %cst_5 = arith.constant 1.000000e+00 : f32
    %20 = vector.broadcast %cst_5 : f32 to vector<8x1xf32>
    %21 = arith.addf %19, %20 : vector<8x1xf32>
    %cst_6 = arith.constant 0.000000e+00 : f32
    %22 = vector.broadcast %cst_6 : f32 to vector<8x1xf32>
    %23 = arith.maximumf %21, %22 : vector<8x1xf32>
    %24 = vector.shape_cast %23 : vector<8x1xf32> to vector<1x8x1xf32>
    %cst_7 = arith.constant dense<0.000000e+00> : vector<1xf32>
    %25 = vector.multi_reduction <add>, %24, %cst_7 [1, 2] : vector<1x8x1xf32> to vector<1xf32>
    %26 = vector.shape_cast %25 : vector<1xf32> to vector<1x1x1xf32>
    %27 = vector.extract %26[0, 0, 0] : f32 from vector<1x1x1xf32>
    %cst_8 = arith.constant 1.250000e-01 : f32
    %28 = arith.mulf %27, %cst_8 : f32
    %29 = vector.extract_strided_slice %9 {offsets = [0, 0], sizes = [8, 3], strides = [1, 1]} : vector<8x6xf32> to vector<8x3xf32>
    %cst_9 = arith.constant dense<0xFF800000> : vector<8xf32>
    %30 = vector.multi_reduction <maximumf>, %29, %cst_9 [1] : vector<8x3xf32> to vector<8xf32>
    %31 = vector.shape_cast %30 : vector<8xf32> to vector<8x1xf32>
    %32 = vector.broadcast %31 : vector<8x1xf32> to vector<8x3xf32>
    %33 = arith.subf %29, %32 : vector<8x3xf32>
    %34 = math.exp %33 : vector<8x3xf32>
    %cst_10 = arith.constant dense<0.000000e+00> : vector<8xf32>
    %35 = vector.multi_reduction <add>, %34, %cst_10 [1] : vector<8x3xf32> to vector<8xf32>
    %36 = vector.shape_cast %35 : vector<8xf32> to vector<8x1xf32>
    %37 = tpu.reciprocal %36 {approx = true} : vector<8x1xf32> -> vector<8x1xf32>
    %38 = vector.broadcast %37 : vector<8x1xf32> to vector<8x3xf32>
    %39 = arith.mulf %34, %38 : vector<8x3xf32>
    %40 = vector.extract_strided_slice %9 {offsets = [0, 3], sizes = [8, 3], strides = [1, 1]} : vector<8x6xf32> to vector<8x3xf32>
    %cst_11 = arith.constant dense<0xFF800000> : vector<8xf32>
    %41 = vector.multi_reduction <maximumf>, %40, %cst_11 [1] : vector<8x3xf32> to vector<8xf32>
    %42 = vector.shape_cast %41 : vector<8xf32> to vector<8x1xf32>
    %43 = vector.broadcast %42 : vector<8x1xf32> to vector<8x3xf32>
    %44 = arith.subf %40, %43 : vector<8x3xf32>
    %45 = math.exp %44 : vector<8x3xf32>
    %cst_12 = arith.constant dense<0.000000e+00> : vector<8xf32>
    %46 = vector.multi_reduction <add>, %45, %cst_12 [1] : vector<8x3xf32> to vector<8xf32>
    %47 = vector.shape_cast %46 : vector<8xf32> to vector<8x1xf32>
    %48 = tpu.reciprocal %47 {approx = true} : vector<8x1xf32> -> vector<8x1xf32>
    %49 = vector.broadcast %48 : vector<8x1xf32> to vector<8x3xf32>
    %50 = arith.mulf %45, %49 : vector<8x3xf32>
    %51 = vector.extract_strided_slice %50 {offsets = [0, 0], sizes = [8, 1], strides = [1, 1]} : vector<8x3xf32> to vector<8x1xf32>
    %52 = vector.broadcast %51 : vector<8x1xf32> to vector<8x3xf32>
    %53 = arith.mulf %39, %52 : vector<8x3xf32>
    %54 = vector.extract_strided_slice %39 {offsets = [0, 0], sizes = [8, 1], strides = [1, 1]} : vector<8x3xf32> to vector<8x1xf32>
    %55 = vector.broadcast %54 : vector<8x1xf32> to vector<8x3xf32>
    %56 = arith.mulf %50, %55 : vector<8x3xf32>
    %57 = arith.addf %53, %56 : vector<8x3xf32>
    %cst_13 = arith.constant dense<0.000000e+00> : vector<3xf32>
    %58 = vector.multi_reduction <add>, %57, %cst_13 [0] : vector<8x3xf32> to vector<3xf32>
    %59 = vector.shape_cast %58 : vector<3xf32> to vector<1x3xf32>
    %60 = vector.extract_strided_slice %50 {offsets = [0, 1], sizes = [8, 1], strides = [1, 1]} : vector<8x3xf32> to vector<8x1xf32>
    %61 = vector.broadcast %60 : vector<8x1xf32> to vector<8x3xf32>
    %62 = arith.mulf %39, %61 : vector<8x3xf32>
    %63 = vector.extract_strided_slice %39 {offsets = [0, 1], sizes = [8, 1], strides = [1, 1]} : vector<8x3xf32> to vector<8x1xf32>
    %64 = vector.broadcast %63 : vector<8x1xf32> to vector<8x3xf32>
    %65 = arith.mulf %50, %64 : vector<8x3xf32>
    %66 = arith.addf %62, %65 : vector<8x3xf32>
    %cst_14 = arith.constant dense<0.000000e+00> : vector<3xf32>
    %67 = vector.multi_reduction <add>, %66, %cst_14 [0] : vector<8x3xf32> to vector<3xf32>
    %68 = vector.shape_cast %67 : vector<3xf32> to vector<1x3xf32>
    %69 = vector.extract_strided_slice %50 {offsets = [0, 2], sizes = [8, 1], strides = [1, 1]} : vector<8x3xf32> to vector<8x1xf32>
    %70 = vector.broadcast %69 : vector<8x1xf32> to vector<8x3xf32>
    %71 = arith.mulf %39, %70 : vector<8x3xf32>
    %72 = vector.extract_strided_slice %39 {offsets = [0, 2], sizes = [8, 1], strides = [1, 1]} : vector<8x3xf32> to vector<8x1xf32>
    %73 = vector.broadcast %72 : vector<8x1xf32> to vector<8x3xf32>
    %74 = arith.mulf %50, %73 : vector<8x3xf32>
    %75 = arith.addf %71, %74 : vector<8x3xf32>
    %cst_15 = arith.constant dense<0.000000e+00> : vector<3xf32>
    %76 = vector.multi_reduction <add>, %75, %cst_15 [0] : vector<8x3xf32> to vector<3xf32>
    %77 = vector.shape_cast %76 : vector<3xf32> to vector<1x3xf32>
    %78 = tpu.concatenate %59, %68, %77 in 0 : vector<1x3xf32>, vector<1x3xf32>, vector<1x3xf32> -> vector<3x3xf32>
    %79 = vector.shape_cast %78 : vector<3x3xf32> to vector<1x3x3xf32>
    %cst_16 = arith.constant dense<0.000000e+00> : vector<1xf32>
    %80 = vector.multi_reduction <add>, %79, %cst_16 [1, 2] : vector<1x3x3xf32> to vector<1xf32>
    %81 = vector.shape_cast %80 : vector<1xf32> to vector<1x1x1xf32>
    %82 = vector.extract %81[0, 0, 0] : f32 from vector<1x1x1xf32>
    %83 = vector.broadcast %82 : f32 to vector<1x1xf32>
    %84 = tpu.reciprocal %83 {approx = true} : vector<1x1xf32> -> vector<1x1xf32>
    %85 = vector.broadcast %84 : vector<1x1xf32> to vector<3x3xf32>
    %86 = arith.mulf %78, %85 : vector<3x3xf32>
    %cst_17 = arith.constant dense<0.000000e+00> : vector<3xf32>
    %87 = vector.multi_reduction <add>, %86, %cst_17 [1] : vector<3x3xf32> to vector<3xf32>
    %88 = vector.shape_cast %87 : vector<3xf32> to vector<3x1xf32>
    %cst_18 = arith.constant dense<0.000000e+00> : vector<3xf32>
    %89 = vector.multi_reduction <add>, %86, %cst_18 [0] : vector<3x3xf32> to vector<3xf32>
    %90 = vector.shape_cast %89 : vector<3xf32> to vector<1x3xf32>
    %91 = math.log %88 : vector<3x1xf32>
    %92 = math.log %90 : vector<1x3xf32>
    %93 = vector.broadcast %91 : vector<3x1xf32> to vector<3x3xf32>
    %94 = vector.broadcast %92 : vector<1x3xf32> to vector<3x3xf32>
    %95 = arith.addf %93, %94 : vector<3x3xf32>
    %96 = math.log %86 : vector<3x3xf32>
    %97 = arith.subf %95, %96 : vector<3x3xf32>
    %98 = arith.mulf %86, %97 : vector<3x3xf32>
    %99 = vector.shape_cast %98 : vector<3x3xf32> to vector<1x3x3xf32>
    %cst_19 = arith.constant dense<0.000000e+00> : vector<1xf32>
    %100 = vector.multi_reduction <add>, %99, %cst_19 [1, 2] : vector<1x3x3xf32> to vector<1xf32>
    %101 = vector.shape_cast %100 : vector<1xf32> to vector<1x1x1xf32>
    %102 = vector.extract %101[0, 0, 0] : f32 from vector<1x1x1xf32>
    %cst_20 = arith.constant 5.000000e+00 : f32
    %103 = arith.mulf %cst_20, %102 : f32
    %104 = arith.addf %28, %103 : f32
    %c0_21 = arith.constant 0 : index
    %c0_22 = arith.constant 0 : index
    %105 = memref.load %arg2[%c0_21, %c0_22] : memref<1x1xf32, #tpu.memory_space<smem>>
    memref.store %104, %arg2[%c0_21, %c0_22] : memref<1x1xf32, #tpu.memory_space<smem>>
    return
  }
}

</mosaic_0001>

<bundles_post_ra>
// kernel: tpu_custom_call.1
= control target key start
LH: loop header
LB: loop body
LE: loop exit
PB: predicated region body
PF: predicated region fallthrough
CT: control target
= control target key end

     0   :  { %v524_v2 = vmov 0   ;;  %s605_s0 = inlined_call_operand.vmem [shape: f32[16,6], index: 0, kind: input, shape index: {}]   ;;  %s606_s1 = inlined_call_operand.vmem [shape: s32[24,1], index: 1, kind: input, shape index: {}]   ;;  %s607_s2 = inlined_call_operand.hbm [shape: f32[1,1], index: 2, kind: output, shape index: {}]  }
   0x1   :  { %v15_v0 = vld [vmem:[%s606_s1 + $0x8] sm:$0xff]  ;;  %v14_v1 = vld [vmem:[%s606_s1] sm:$0xff]  ;;  %487 = vset.pattern.permute.xlu1 %v524_v2  ;;  %486 = vset.pattern.permute.xlu0 %v524_v2 }
   0x2   :  { %7 = vsyncpa [#allocation3], 0  ;;  %23 = vperm.xlu0 %486, %v15_v0   ;;  %20 = vperm.xlu1 %487, %v14_v1   ;;  %v16_v3 = vld [vmem:[%s606_s1 + $0x10] sm:$0xff]  ;;  %v13_v4 = vld [vmem:[%s605_s0 + $0x8] sm:$0xff]  ;;  %v17_v16 = vlaneseq  ;;  %vm37_vm0 = vcmask 130048   ;;  %v525_v20 = vmov 0.0  }
   0x3   :  { %v61_v5 = vand.u32 4294901760, %v13_v4  ;;  %v12_v6 = vld [vmem:[%s605_s0] sm:$0xff]  ;;  %vm306_vm4 = vcmask 48152   ;;  %vm294_vm5 = vcmask 23552   ;;  %s526_s0 = smov 125   ;;  %vm270_vm6 = vcmask 48128  }
   0x4   :  { %v63_v8 = vand.u32 4294901760, %v12_v6  ;;  %v18_v17 = vand.u32 127, %v17_v16  ;;  %vm390_vm7 = vcmask 1040384   ;;  %vm392_vm8 = vcmask 1041408   ;;  %s445_s22 = sshll.u32 %s607_s2, 4  ;;  %s532_s27 = smov [#allocation2]   ;;  %s446_s22 = int_to_ptr.hbm [resolvable:$true] %s445_s22 }
   0x5   :  { %v105_v7 = vsub.f32 %v13_v4, %v61_v5  ;;  %62 = vmatpush.msra.mxu0 %v61_v5  ;;  %467 = vmatpush.msra.mxu2 %v61_v5  ;;  %vm394_vm9 = vcmask 18432   ;;  %vm282_vm10 = vcmask 7168  }
   0x6   :  { %v111_v10 = vsub.f32 %v12_v6, %v63_v8 }
   0x7   :  { %v106_v9 = vand.u32 4294901760, %v105_v7  ;;  %64 = vmatpush.msra.mxu0 %v63_v8  ;;  %468 = vmatpush.msra.mxu2 %v63_v8 }
   0x8   :  { %v112_v12 = vand.u32 4294901760, %v111_v10 }
   0x9   :  { %145 = vmatpush.msrb.mxu2 %v105_v7  ;;  %v107_v11 = vsub.f32 %v105_v7, %v106_v9  ;;  %219 = vmatpush.msrb.mxu0 %v106_v9 }
   0xa   :  { %26 = vperm.xlu0 %486, %v16_v3   ;;  %v113_v14 = vsub.f32 %v111_v10, %v112_v12 }
   0xb   :  { %148 = vmatpush.msrb.mxu2 %v111_v10  ;;  %v108_v13 = vand.u32 4294901760, %v107_v11  ;;  %223 = vmatpush.msrb.mxu0 %v112_v12 }
   0xc   :  { %v114_v15 = vand.u32 4294901760, %v113_v14 }
   0xd   :  { %109 = vmatpush.msra.mxu1 %v108_v13  ;;  %469 = vmatpush.msra.mxu3 %v108_v13 }
   0xf   :  { %115 = vmatpush.msra.mxu1 %v114_v15  ;;  %470 = vmatpush.msra.mxu3 %v114_v15 }
  0x11   :  { %252 = vmatpush.msrb.mxu1 %v61_v5  ;;  %180 = vmatpush.msrb.mxu3 %v61_v5 }
  0x13   :  { %254 = vmatpush.msrb.mxu1 %v63_v8  ;;  %182 = vmatpush.msrb.mxu3 %v63_v8 }
  0x74   :  { %v24_v18 = vpop.permute.xlu0 %23  ;;  %v21_v19 = vpop.permute.xlu1 %20 }
  0x75   :  { %vm29_vm1 = vcmp.eq.s32.totalorder %v18_v17, %v24_v18  ;;  %vm28_vm2 = vcmp.eq.s32.totalorder %v18_v17, %v21_v19 }
  0x76   :  { %v456_v21 = vsel %vm29_vm1, 1.0, %v525_v20  ;;  %v455_v22 = vsel %vm28_vm2, 1.0, %v525_v20 }
  0x77   :  { %v42_v23 = vsel %vm37_vm0, %v456_v21, 0  ;;  %v39_v24 = vsel %vm37_vm0, %v455_v22, 0  ;;  %458 = vmatmul.msk.f32.vlgmr.msra.gmra.mxu1 %vm37_vm0, %v455_v22  ;;  %459 = vmatmul.msk.f32.vlgmr.msra.gmra.mxu3 %vm37_vm0, %v456_v21 }
  0x78   :  { %v74_v25 = vsub.f32 %v42_v23, %v42_v23  ;;  %v66_v26 = vsub.f32 %v39_v24, %v39_v24  ;;  %v527_v23 = vmov 2   ;;  %v528_v24 = vmov 1  }
  0x79   :  { %489 = vset.pattern.permute.xlu2 %v527_v23  ;;  %488 = vset.pattern.permute.xlu0 %v528_v24 }
  0x7a   :  { %v67_v27 = vand.u32 4294901760, %v66_v26  ;;  %v75_v28 = vand.u32 4294901760, %v74_v25 }
  0x7c   :  { %v27_v29 = vpop.permute.xlu0 %26  ;;  %v68_v30 = vsub.f32 %v66_v26, %v67_v27  ;;  %v76_v31 = vsub.f32 %v74_v25, %v75_v28 }
  0x7d   :  { %vm30_vm3 = vcmp.eq.s32.totalorder %v18_v17, %v27_v29 }
  0x7e   :  { %v457_v32 = vsel %vm30_vm3, 1.0, %v525_v20  ;;  %v69_v33 = vand.u32 4294901760, %v68_v30  ;;  %v77_v34 = vand.u32 4294901760, %v76_v31 }
  0x7f   :  { %v45_v35 = vsel %vm37_vm0, %v457_v32, 0  ;;  %460 = vmatmul.msk.f32.gmra.mxu3 %vm37_vm0, %v457_v32  ;;  %464 = vmatmul.msk.f32.vlgmr.msrb.gmra.mxu1 %vm37_vm0, %v455_v22 }
  0x80   :  { %v82_v36 = vsub.f32 %v45_v35, %v45_v35  ;;  %70 = vmatmul.f32.vlgmr.msra.gmra.mxu0 %v69_v33  ;;  %78 = vmatmul.f32.vlgmr.msra.gmra.mxu2 %v77_v34  ;;  %v531_v33 = vmov 5  }
  0x82   :  { %v83_v37 = vand.u32 4294901760, %v82_v36 }
  0x84   :  { %v84_v38 = vsub.f32 %v82_v36, %v83_v37 }
  0x86   :  { %v85_v39 = vand.u32 4294901760, %v84_v38 }
  0x87   :  { %186 = vmatmul.f32.vlgmr.msrb.gmra.mxu3 %v67_v27  ;;  %465 = vmatmul.msk.f32.gmra.mxu1 %vm37_vm0, %v456_v21 }
  0x88   :  { %86 = vmatmul.f32.gmra.mxu2 %v85_v39  ;;  %461 = vmatmul.msk.f32.vlgmr.msrb.gmra.mxu0 %vm37_vm0, %v455_v22 }
  0x8f   :  { %192 = vmatmul.f32.gmra.mxu3 %v75_v28  ;;  %466 = vmatmul.msk.f32.gmra.mxu1 %vm37_vm0, %v457_v32  ;;  %v529_v28 = vmov 3  }
  0x90   :  { %151 = vmatmul.f32.vlgmr.msrb.gmra.mxu2 %v66_v26  ;;  %462 = vmatmul.msk.f32.gmra.mxu0 %vm37_vm0, %v456_v21 }
  0x97   :  { %198 = vmatmul.f32.gmra.mxu3 %v83_v37 }
  0x98   :  { %156 = vmatmul.f32.gmra.mxu2 %v74_v25  ;;  %463 = vmatmul.msk.f32.gmra.mxu0 %vm37_vm0, %v457_v32  ;;  %v530_v32 = vmov 4  }
  0xa0   :  { %161 = vmatmul.f32.gmra.mxu2 %v82_v36 }
  0xf4   :  { %v118_v40 = vpop.f32.mrf.mxu1 }
  0xfa   :  { %v122_v41 = vpop.f32.mrf.mxu3 }
  0xfc   :  { %v257_v52 = vpop.f32.mrf.mxu1 }
  0xfd   :  { %v71_v42 = vpop.f32.mrf.mxu0 }
  0xfe   :  { %v119_v43 = vadd.f32 %v118_v40, %v71_v42 }
 0x102   :  { %v126_v45 = vpop.f32.mrf.mxu3 }
 0x103   :  { %v79_v44 = vpop.f32.mrf.mxu2 }
 0x104   :  { %v123_v55 = vadd.f32 %v122_v41, %v79_v44  ;;  %v261_v62 = vpop.f32.mrf.mxu1 }
 0x105   :  { %v226_v49 = vpop.f32.mrf.mxu0 }
 0x10a   :  { %v187_v48 = vpop.f32.mrf.mxu3 }
 0x10b   :  { %v87_v46 = vpop.f32.mrf.mxu2 }
 0x10c   :  { %v127_v47 = vadd.f32 %v126_v45, %v87_v46  ;;  %v265_v9 = vpop.f32.mrf.mxu1 }
 0x10d   :  { %v230_v60 = vpop.f32.mrf.mxu0 }
 0x112   :  { %v193_v57 = vpop.f32.mrf.mxu3 }
 0x113   :  { %v152_v50 = vpop.f32.mrf.mxu2 }
 0x114   :  { %v153_v51 = vadd.f32 %v152_v50, %v119_v43 }
 0x115   :  { %v234_v7 = vpop.f32.mrf.mxu0 }
 0x116   :  { %v188_v53 = vadd.f32 %v187_v48, %v153_v51 }
 0x118   :  { %v227_v54 = vadd.f32 %v226_v49, %v188_v53 }
 0x11a   :  { %v575_v56 = vadd.f32 %v257_v52, %v227_v54  ;;  %v199_v5 = vpop.f32.mrf.mxu3 }
 0x11b   :  { %v157_v58 = vpop.f32.mrf.mxu2 }
 0x11c   :  { %v158_v59 = vadd.f32 %v157_v58, %v123_v55 }
 0x11e   :  { %v194_v61 = vadd.f32 %v193_v57, %v158_v59 }
 0x120   :  { %v231_v63 = vadd.f32 %v230_v60, %v194_v61 }
 0x122   :  { %v577_v0 = vadd.f32 %v261_v62, %v231_v63 }
 0x123   :  { %v162_v1 = vpop.f32.mrf.mxu2 }
 0x124   :  { %v163_v2 = vadd.f32 %v162_v1, %v127_v47  ;;  %v307_v3 = vsel %vm306_vm4, %v577_v0, -inf  ;;  %v295_v4 = vsel %vm294_vm5, %v577_v0, -inf  ;;  %v268_v40 = vsub.f32 %v575_v56, %v577_v0 }
 0x125   :  { %308 = vmax.xlane.f32.xlu2 %v307_v3  ;;  %296 = vmax.xlane.f32.xlu1 %v295_v4 }
 0x126   :  { %v200_v6 = vadd.f32 %v199_v5, %v163_v2  ;;  %v269_v41 = vmul.f32 %v268_v40, %v268_v40 }
 0x128   :  { %v235_v8 = vadd.f32 %v234_v7, %v200_v6  ;;  %v271_v43 = vsel %vm270_vm6, %v269_v41, 0.0 }
 0x12a   :  { %v266_v10 = vadd.f32 %v265_v9, %v235_v8 }
 0x12c   :  { %v274_v11 = vsub.f32 %v575_v56, %v266_v10 }
 0x12e   :  { %v275_v42 = vmul.f32 %v274_v11, %v274_v11 }
 0x130   :  { %v276_v44 = vsel %vm270_vm6, %v275_v42, 0.0 }
 0x198   :  { %v309_v12 = vpop.xlane.xlu2 %308  ;;  %v297_v13 = vpop.xlane.xlu1 %296 }
 0x199   :  { %v310_v14 = vsub.f32 %v577_v0, %v309_v12  ;;  %v298_v15 = vsub.f32 %v577_v0, %v297_v13 }
 0x19b   :  { %v311_v16 = vmul.f32 1.442695, %v310_v14  ;;  %v299_v17 = vmul.f32 1.442695, %v298_v15 }
 0x19d   :  { %494 = vpow2.f32 %v311_v16 }
 0x19e   :  { %496 = vpow2.f32 %v299_v17 }
 0x1a3   :  { %v495_v18 = vpop.eup %494 }
 0x1a4   :  { %v497_v19 = vpop.eup %496  ;;  %314 = vrot.lane.b32.xlu2 %v495_v18, %s526_s0 }
 0x1a5   :  { %v301_v20 = vsel %vm294_vm5, %v497_v19, 0.0 }
 0x1a6   :  { %302 = vadd.xlane.f32.xlu0 %v301_v20 }
 0x1fe   :  { %v315_v21 = vpop.permute.xlu2 %314 }
 0x1ff   :  { %v317_v22 = vsel %vm294_vm5, %v315_v21, 0.0 }
 0x200   :  { %318 = vadd.xlane.f32.xlu2 %v317_v22 }
 0x219   :  { %v303_v25 = vpop.xlane.xlu0 %302 }
 0x21a   :  { %498 = vrcp.f32 %v303_v25 }
 0x220   :  { %v499_v26 = vpop.eup %498 }
 0x221   :  { %v305_v27 = vmul.f32 %v499_v26, %v497_v19 }
 0x223   :  { %374 = vperm.xlu2 %489, %v305_v27   ;;  %352 = vperm.xlu0 %488, %v305_v27  }
 0x224   :  { %330 = vperm.xlu1 %487, %v305_v27  }
 0x22b   :  { %493 = vset.pattern.permute.xlu0 %v527_v23 }
 0x22c   :  { %490 = vset.pattern.permute.xlu1 %v529_v28 }
 0x273   :  { %v319_v29 = vpop.xlane.xlu2 %318 }
 0x274   :  { %500 = vrcp.f32 %v319_v29 }
 0x27a   :  { %v501_v30 = vpop.eup %500 }
 0x27b   :  { %v321_v31 = vmul.f32 %v501_v30, %v495_v18 }
 0x27d   :  { %324 = vperm.xlu1 %490, %v321_v31   ;;  %v375_v34 = vpop.permute.xlu2 %374 }
 0x27e   :  { %v377_v35 = vmul.f32 %v375_v34, %v321_v31 }
 0x285   :  { %491 = vset.pattern.permute.xlu1 %v530_v32 }
 0x286   :  { %347 = vperm.xlu1 %491, %v321_v31  }
 0x28e   :  { %492 = vset.pattern.permute.xlu1 %v531_v33 }
 0x28f   :  { %369 = vperm.xlu1 %492, %v321_v31  }
 0x295   :  { %v353_v36 = vpop.permute.xlu0 %352 }
 0x296   :  { %v355_v37 = vmul.f32 %v353_v36, %v321_v31  ;;  %v331_v38 = vpop.permute.xlu1 %330 }
 0x297   :  { %v333_v39 = vmul.f32 %v331_v38, %v321_v31  ;;  %379 = vrot.lane.b32.xlu1 %v377_v35, %s526_s0 }
 0x298   :  { %357 = vrot.lane.b32.xlu0 %v355_v37, %s526_s0 }
 0x299   :  { %335 = vrot.lane.b32.xlu2 %v333_v39, %s526_s0 }
 0x2c2   :  { %272 = vadd.xlane.f32.xlu2 %v271_v43  ;;  %277 = vadd.xlane.f32.xlu0 %v276_v44 }
 0x2ef   :  { %v325_v45 = vpop.permute.xlu1 %324 }
 0x2f0   :  { %v327_v47 = vmul.f32 %v325_v45, %v305_v27 }
 0x2f3   :  { %v336_v48 = vpop.permute.xlu2 %335 }
 0x2f4   :  { %v338_v49 = vadd.f32 %v336_v48, %v327_v47 }
 0x2f6   :  { %v339_v50 = vsel %vm294_vm5, %v338_v49, 0.0 }
 0x2f7   :  { %v340_v52 = vrot.slane %v339_v50, 4 }
 0x2f8   :  { %v348_v46 = vpop.permute.xlu1 %347 }
 0x2f9   :  { %v341_v53 = vadd.f32 %v340_v52, %v339_v50  ;;  %v350_v55 = vmul.f32 %v348_v46, %v305_v27 }
 0x2fb   :  { %v342_v60 = vrot.slane %v341_v53, 2 }
 0x2fd   :  { %v343_v2 = vadd.f32 %v342_v60, %v341_v53 }
 0x2ff   :  { %v344_v7 = vrot.slane %v343_v2, 1 }
 0x301   :  { %v370_v51 = vpop.permute.xlu1 %369  ;;  %v345_v12 = vadd.f32 %v344_v7, %v343_v2 }
 0x302   :  { %v372_v54 = vmul.f32 %v370_v51, %v305_v27 }
 0x309   :  { %v380_v56 = vpop.permute.xlu1 %379 }
 0x30a   :  { %v358_v57 = vpop.permute.xlu0 %357  ;;  %v382_v58 = vadd.f32 %v380_v56, %v372_v54 }
 0x30b   :  { %v360_v59 = vadd.f32 %v358_v57, %v350_v55 }
 0x30c   :  { %v383_v61 = vsel %vm294_vm5, %v382_v58, 0.0 }
 0x30d   :  { %v361_v62 = vsel %vm294_vm5, %v360_v59, 0.0  ;;  %v384_v63 = vrot.slane %v383_v61, 4 }
 0x30e   :  { %v362_v0 = vrot.slane %v361_v62, 4 }
 0x30f   :  { %v385_v1 = vadd.f32 %v384_v63, %v383_v61 }
 0x310   :  { %v363_v3 = vadd.f32 %v362_v0, %v361_v62 }
 0x311   :  { %v386_v4 = vrot.slane %v385_v1, 2 }
 0x312   :  { %v364_v5 = vrot.slane %v363_v3, 2 }
 0x313   :  { %v387_v6 = vadd.f32 %v386_v4, %v385_v1 }
 0x314   :  { %v365_v8 = vadd.f32 %v364_v5, %v363_v3 }
 0x315   :  { %v388_v9 = vrot.slane %v387_v6, 1 }
 0x316   :  { %v366_v10 = vrot.slane %v365_v8, 1 }
 0x317   :  { %v389_v11 = vadd.f32 %v388_v9, %v387_v6 }
 0x318   :  { %v367_v13 = vadd.f32 %v366_v10, %v365_v8 }
 0x31a   :  { %v391_v14 = vsel %vm390_vm7, %v345_v12, %v367_v13 }
 0x31b   :  { %v393_v15 = vsel %vm392_vm8, %v391_v14, %v389_v11 }
 0x31c   :  { %v395_v16 = vsel %vm394_vm9, %v393_v15, 0.0 }
 0x31d   :  { %396 = vadd.xlane.f32.xlu2 %v395_v16 }
 0x335   :  { %v273_v17 = vpop.xlane.xlu2 %272  ;;  %v278_v18 = vpop.xlane.xlu0 %277 }
 0x336   :  { %v279_v19 = vsub.f32 %v273_v17, %v278_v18 }
 0x338   :  { %v280_v20 = vadd.f32 1.0, %v279_v19 }
 0x33a   :  { %v281_v21 = vmax.f32 %v280_v20, 0.0 }
 0x33c   :  { %v283_v22 = vsel %vm282_vm10, %v281_v21, 0.0 }
 0x33d   :  { %284 = vadd.xlane.f32.xlu1 %v283_v22 }
 0x390   :  { %v397_v23 = vpop.xlane.xlu2 %396 }
 0x391   :  { %v398_v24 = vrot.slane %v397_v23, 4 }
 0x393   :  { %v399_v25 = vadd.f32 %v398_v24, %v397_v23 }
 0x395   :  { %v400_v26 = vrot.slane %v399_v25, 2 }
 0x397   :  { %v401_v30 = vadd.f32 %v400_v26, %v399_v25 }
 0x399   :  { %v402_v33 = vrot.slane %v401_v30, 1 }
 0x39b   :  { %v403_v36 = vadd.f32 %v402_v33, %v401_v30 }
 0x3b0   :  { %v285_v27 = vpop.xlane.xlu1 %284 }
 0x3b1   :  { %v286_v28 = vrot.slane %v285_v27, 4 }
 0x3b3   :  { %v287_v29 = vadd.f32 %v286_v28, %v285_v27 }
 0x3b5   :  { %v288_v31 = vrot.slane %v287_v29, 2 }
 0x3b7   :  { %v289_v32 = vadd.f32 %v288_v31, %v287_v29 }
 0x3b9   :  { %v290_v34 = vrot.slane %v289_v32, 1 }
 0x3bb   :  { %v291_v35 = vadd.f32 %v290_v34, %v289_v32 }
 0x3bd   :  { %471 = vpush %v291_v35 }
 0x3be   :  { %473 = vpush %v403_v36 }
 0x3ee   :  { %s597_s1 = spop %471 }
 0x3ef   :  { %s474_s19 = spop %473  ;;  %s293_s23 = smul.f32 0.125, %s597_s1 }
 0x3f0   :  { %v405_v37 = vstv %s474_s19 }
 0x3f1   :  { %502 = vrcp.f32 %v405_v37 }
 0x3f7   :  { %v503_v38 = vpop.eup %502 }
 0x3f8   :  { %v407_v39 = vmul.f32 %v503_v38, %v393_v15 }
 0x3fa   :  { %v408_v40 = vsel %vm394_vm9, %v407_v39, 0.0 }
 0x3fb   :  { %409 = vadd.xlane.f32.xlu0 %v408_v40  ;;  %v411_v41 = vrot.slane %v408_v40, 4 }
 0x3fd   :  { %v412_v42 = vadd.f32 %v411_v41, %v408_v40 }
 0x3ff   :  { %v413_v43 = vrot.slane %v412_v42, 2 }
 0x401   :  { %v414_v44 = vadd.f32 %v413_v43, %v412_v42 }
 0x403   :  { %v415_v45 = vrot.slane %v414_v44, 1 }
 0x405   :  { %v416_v46 = vadd.f32 %v415_v45, %v414_v44 }
 0x407   :  { %504 = vlog2.f32 %v416_v46 }
 0x408   :  { %506 = vlog2.f32 %v407_v39 }
 0x40d   :  { %v505_v48 = vpop.eup %504 }
 0x40e   :  { %v507_v49 = vpop.eup %506  ;;  %v420_v52 = vmul.f32 0.6931472, %v505_v48 }
 0x40f   :  { %v423_v54 = vmul.f32 0.6931472, %v507_v49 }
 0x46e   :  { %v410_v47 = vpop.xlane.xlu0 %409 }
 0x46f   :  { %508 = vlog2.f32 %v410_v47 }
 0x475   :  { %v509_v50 = vpop.eup %508 }
 0x476   :  { %v418_v51 = vmul.f32 0.6931472, %v509_v50 }
 0x478   :  { %v421_v53 = vadd.f32 %v420_v52, %v418_v51 }
 0x47a   :  { %v424_v55 = vsub.f32 %v421_v53, %v423_v54 }
 0x47c   :  { %v425_v56 = vmul.f32 %v424_v55, %v407_v39 }
 0x47e   :  { %v426_v57 = vsel %vm394_vm9, %v425_v56, 0.0 }
 0x47f   :  { %427 = vadd.xlane.f32.xlu1 %v426_v57 }
 0x4f2   :  { %v428_v58 = vpop.xlane.xlu1 %427 }
 0x4f3   :  { %v429_v59 = vrot.slane %v428_v58, 4 }
 0x4f5   :  { %v430_v60 = vadd.f32 %v429_v59, %v428_v58 }
 0x4f7   :  { %v431_v61 = vrot.slane %v430_v60, 2 }
 0x4f9   :  { %v432_v62 = vadd.f32 %v431_v61, %v430_v60 }
 0x4fb   :  { %v433_v63 = vrot.slane %v432_v62, 1 }
 0x4fd   :  { %v434_v0 = vadd.f32 %v433_v63, %v432_v62 }
 0x4ff   :  { %475 = vpush %v434_v0 }
 0x530   :  { %s476_s24 = spop %475 }
 0x531   :  { %s436_s25 = smul.f32 5.0, %s476_s24 }
 0x533   :  { %s437_s26 = sadd.f32 %s436_s25, %s293_s23 }
 0x535   :  { %439 = sst [smem:[#allocation2]] %s437_s26 }
 0x536   :  { %448 = dma.smem_to_hbm %s532_s27, 16, %s446_s22, [#allocation3]  }
 0x537   :  { %522 = dma.done.wait [#allocation3], 16  }
 0x538   :  { %523 = vsyncadd [#allocation3], 4294967280 }
 0x539   :  { %453 = sfence }
 0x53a   :  { %454 = vsyncpa [#allocation3], 1 }

</bundles_post_ra>
